<compile_context>
chip_gen: v6e
topology: v6e:2x2x1
jax: 0.10.0
libtpu: 0.0.40
codegen_flags: <defaults>
</compile_context>

<pallas_src>
import functools

import jax
import jax.numpy as jnp
from jax.experimental import pallas as pl
from jax.experimental.pallas import tpu as pltpu


def _soft_xent_kernel(x_ref, t_ref, out_ref, *, n_rows, tile_n):
    """One row block: masked partial loss sum -> broadcast into a (1, 8, 128) tile."""
    x = x_ref[...].astype(jnp.float32)      # (tile_n, C)
    t = t_ref[...].astype(jnp.float32)      # (tile_n, C)

    # Numerically stable log-sum-exp along the class axis.
    m = jnp.max(x, axis=-1, keepdims=True)                       # (tile_n, 1)
    sum_e = jnp.sum(jnp.exp(x - m), axis=-1, keepdims=True)      # (tile_n, 1)
    lse = m + jnp.log(sum_e)                                     # (tile_n, 1)

    # loss_row = sum_c t*(lse - x) = lse*sum_c(t) - sum_c(t*x)
    sum_t = jnp.sum(t, axis=-1, keepdims=True)                   # (tile_n, 1)
    sum_tx = jnp.sum(t * x, axis=-1, keepdims=True)              # (tile_n, 1)
    row_loss = lse * sum_t - sum_tx                              # (tile_n, 1)

    # Mask rows beyond the true batch size (ragged last block).  Must be a
    # select, not a multiply, so NaN/Inf from garbage rows cannot leak.
    row0 = pl.program_id(0) * tile_n
    rows = row0 + jax.lax.broadcasted_iota(jnp.int32, row_loss.shape, 0)
    row_loss = jnp.where(rows < n_rows, row_loss, jnp.float32(0.0))

    partial = jnp.sum(row_loss)
    # One unmasked, lane-dense vector store per grid step.
    out_ref[...] = jnp.full(out_ref.shape, partial, dtype=out_ref.dtype)


def _round_up(a, b):
    return ((a + b - 1) // b) * b


def soft_target_cross_entropy(x, target, *, tile_n=None,
                              max_tile_rows=1024,
                              vmem_budget_bytes=24 * 1024 * 1024):
    """Pallas implementation of SoftTargetCrossEntropy.forward(x, target)."""
    assert x.shape == target.shape, "x and target must have the same shape"
    C = x.shape[-1]
    x2 = x.reshape(-1, C)
    t2 = target.reshape(-1, C)
    N = x2.shape[0]

    x_bytes = jnp.dtype(x2.dtype).itemsize
    t_bytes = jnp.dtype(t2.dtype).itemsize

    # Sublane multiple for the narrower input dtype (8 for f32, 16 for bf16).
    sublane = max(8, 32 // min(x_bytes, t_bytes))

    # Per-row VMEM footprint: double-buffered native-width inputs plus ~4 f32
    # intermediates (x_f32, exp(x-m), t_f32, t*x) that live during compute.
    bytes_per_row = C * (2 * (x_bytes + t_bytes) + 4 * 4)
    budget_rows = max(vmem_budget_bytes // bytes_per_row, sublane)

    if tile_n is None:
        tile_n = min(_round_up(N, sublane), budget_rows, max_tile_rows)
    tile_n = max((tile_n // sublane) * sublane, sublane)

    # v7x megacore: ensure at least 2 parallel grid blocks whenever possible.
    if N > sublane:
        tile_n = min(tile_n, _round_up(pl.cdiv(N, 2), sublane))

    num_blocks = pl.cdiv(N, tile_n)

    kernel = functools.partial(_soft_xent_kernel, n_rows=N, tile_n=tile_n)

    partials = pl.pallas_call(
        kernel,
        out_shape=jax.ShapeDtypeStruct((num_blocks, 8, 128), jnp.float32),
        grid_spec=pltpu.PrefetchScalarGridSpec(
            num_scalar_prefetch=0,
            grid=(num_blocks,),
            in_specs=[
                pl.BlockSpec((tile_n, C), lambda i: (i, 0)),
                pl.BlockSpec((tile_n, C), lambda i: (i, 0)),
            ],
            out_specs=pl.BlockSpec((1, 8, 128), lambda i: (i, 0, 0)),
        ),
        compiler_params=pltpu.CompilerParams(
            # Independent per-block partials -> both TensorCores usable on v7x.
            dimension_semantics=("parallel",),
            # Safe on v7x's 64 MiB physical VMEM; tiles are capped anyway.
            vmem_limit_bytes=48 * 1024 * 1024,
        ),
    )(x2, t2)

    # Final reduction + mean over the true row count, in plain JAX.
    return jnp.sum(partials[:, 0, 0]) / jnp.float32(N)


def _reference(x, target):
    logp = jax.nn.log_softmax(x.astype(jnp.float32), axis=-1)
    loss = jnp.sum(-target.astype(jnp.float32) * logp, axis=-1)
    return jnp.mean(loss)


if __name__ == "__main__":
    key = jax.random.PRNGKey(0)
    kx, kt, kx2, kt2 = jax.random.split(key, 4)

    # Test 1: small f32 case (8 rows, 32 classes; soft targets sum to 1 per row).
    N, C = 8, 32
    x = jax.random.normal(kx, (N, C), dtype=jnp.float32)
    target = jax.nn.softmax(jax.random.normal(kt, (N, C), dtype=jnp.float32), axis=-1)
    loss = jax.block_until_ready(soft_target_cross_entropy(x, target))
    ref = _reference(x, target)
    assert jnp.allclose(loss, ref, rtol=1e-5, atol=1e-5), (loss, ref)

    # Test 2: bf16 inputs with a ragged batch (exercises the in-kernel mask on
    # the partial last block and the native-width bf16 streaming path).
    N2, C2 = 19, 160
    xb = jax.random.normal(kx2, (N2, C2), dtype=jnp.float32).astype(jnp.bfloat16)
    tb = jax.nn.softmax(jax.random.normal(kt2, (N2, C2), dtype=jnp.float32),
                        axis=-1).astype(jnp.bfloat16)
    loss2 = jax.block_until_ready(soft_target_cross_entropy(xb, tb))
    ref2 = _reference(xb, tb)
    assert jnp.allclose(loss2, ref2, rtol=1e-4, atol=1e-4), (loss2, ref2)

    print("KERNEL_OK")
</pallas_src>

<mosaic_0001>
module attributes {stable_mosaic.version = 11 : i64} {
  func.func @_soft_xent_kernel(%arg0: i32, %arg1: memref<8x32xf32, #tpu.memory_space<vmem>>, %arg2: memref<8x32xf32, #tpu.memory_space<vmem>>, %arg3: memref<1x8x128xf32, #tpu.memory_space<vmem>>) attributes {dimension_semantics = [#tpu.dimension_semantics<parallel>], iteration_bounds = array<i64: 1>, scalar_prefetch = 0 : i64, scratch_operands = 0 : i64, tpu.core_type = #tpu.core_type<tc>, window_params = [{transform_indices = @transform_0, window_bounds = array<i64: 8, 32>}, {transform_indices = @transform_1, window_bounds = array<i64: 8, 32>}, {transform_indices = @transform_2, window_bounds = array<i64: 1, 8, 128>}]} {
    %c0 = arith.constant 0 : index
    %c0_0 = arith.constant 0 : index
    %0 = vector.load %arg1[%c0, %c0_0] : memref<8x32xf32, #tpu.memory_space<vmem>>, vector<8x32xf32>
    %c0_1 = arith.constant 0 : index
    %c0_2 = arith.constant 0 : index
    %1 = vector.load %arg2[%c0_1, %c0_2] : memref<8x32xf32, #tpu.memory_space<vmem>>, vector<8x32xf32>
    %cst = arith.constant dense<0xFF800000> : vector<8xf32>
    %2 = vector.multi_reduction <maximumf>, %0, %cst [1] : vector<8x32xf32> to vector<8xf32>
    %3 = vector.shape_cast %2 : vector<8xf32> to vector<8x1xf32>
    %4 = vector.broadcast %3 : vector<8x1xf32> to vector<8x32xf32>
    %5 = arith.subf %0, %4 : vector<8x32xf32>
    %6 = math.exp %5 : vector<8x32xf32>
    %cst_3 = arith.constant dense<0.000000e+00> : vector<8xf32>
    %7 = vector.multi_reduction <add>, %6, %cst_3 [1] : vector<8x32xf32> to vector<8xf32>
    %8 = vector.shape_cast %7 : vector<8xf32> to vector<8x1xf32>
    %9 = math.log %8 : vector<8x1xf32>
    %10 = arith.addf %3, %9 : vector<8x1xf32>
    %cst_4 = arith.constant dense<0.000000e+00> : vector<8xf32>
    %11 = vector.multi_reduction <add>, %1, %cst_4 [1] : vector<8x32xf32> to vector<8xf32>
    %12 = vector.shape_cast %11 : vector<8xf32> to vector<8x1xf32>
    %13 = arith.mulf %1, %0 : vector<8x32xf32>
    %cst_5 = arith.constant dense<0.000000e+00> : vector<8xf32>
    %14 = vector.multi_reduction <add>, %13, %cst_5 [1] : vector<8x32xf32> to vector<8xf32>
    %15 = vector.shape_cast %14 : vector<8xf32> to vector<8x1xf32>
    %16 = arith.mulf %10, %12 : vector<8x1xf32>
    %17 = arith.subf %16, %15 : vector<8x1xf32>
    %c8_i32 = arith.constant 8 : i32
    %18 = arith.muli %arg0, %c8_i32 : i32
    %19 = tpu.iota {dimensions = array<i32: 0>} : vector<8x1xi32>
    %20 = vector.broadcast %18 : i32 to vector<8x1xi32>
    %21 = arith.addi %20, %19 : vector<8x1xi32>
    %c8_i32_6 = arith.constant 8 : i32
    %22 = vector.broadcast %c8_i32_6 : i32 to vector<8x1xi32>
    %23 = arith.cmpi slt, %21, %22 : vector<8x1xi32>
    %cst_7 = arith.constant 0.000000e+00 : f32
    %24 = vector.broadcast %cst_7 : f32 to vector<8x1xf32>
    %25 = arith.select %23, %17, %24 : vector<8x1xi1>, vector<8x1xf32>
    %26 = vector.shape_cast %25 : vector<8x1xf32> to vector<1x8x1xf32>
    %cst_8 = arith.constant dense<0.000000e+00> : vector<1xf32>
    %27 = vector.multi_reduction <add>, %26, %cst_8 [1, 2] : vector<1x8x1xf32> to vector<1xf32>
    %28 = vector.shape_cast %27 : vector<1xf32> to vector<1x1x1xf32>
    %29 = vector.extract %28[0, 0, 0] : f32 from vector<1x1x1xf32>
    %30 = vector.broadcast %29 : f32 to vector<1x8x128xf32>
    %c0_9 = arith.constant 0 : index
    %c0_10 = arith.constant 0 : index
    %c0_11 = arith.constant 0 : index
    %31 = vector.load %arg3[%c0_9, %c0_10, %c0_11] : memref<1x8x128xf32, #tpu.memory_space<vmem>>, vector<1x8x128xf32>
    tpu.vector_store %arg3[%c0_9, %c0_10, %c0_11], %30 {strides = array<i32>} : memref<1x8x128xf32, #tpu.memory_space<vmem>>, vector<1x8x128xf32>,
    return
  }
  func.func @transform_0(%arg0: i32) -> (i32, i32) {
    %c0_i32 = arith.constant 0 : i32
    %c0_i32_0 = arith.constant 0 : i32
    return %arg0, %c0_i32 : i32, i32
  }
  func.func @transform_1(%arg0: i32) -> (i32, i32) {
    %c0_i32 = arith.constant 0 : i32
    %c0_i32_0 = arith.constant 0 : i32
    return %arg0, %c0_i32 : i32, i32
  }
  func.func @transform_2(%arg0: i32) -> (i32, i32, i32) {
    %c0_i32 = arith.constant 0 : i32
    %c0_i32_0 = arith.constant 0 : i32
    %c0_i32_1 = arith.constant 0 : i32
    return %arg0, %c0_i32, %c0_i32_0 : i32, i32, i32
  }
}

</mosaic_0001>

<bundles_post_ra>
// kernel: tpu_custom_call.1
= control target key start
LH: loop header
LB: loop body
LE: loop exit
PB: predicated region body
PF: predicated region fallthrough
CT: control target
= control target key end

     0   :  { %7 = vsyncpa [#allocation3], 0  ;;  %s198_s0 = inlined_call_operand.hbm [shape: f32[8,32], index: 0, kind: input, shape index: {}]   ;;  %s199_s1 = inlined_call_operand.hbm [shape: f32[8,32], index: 1, kind: input, shape index: {}]   ;;  %s200_s2 = inlined_call_operand.hbm [shape: f32[1,8,128], index: 2, kind: output, shape index: {}]  }
   0x1   :  { %8 = vsyncpa [#allocation6], 0 }
   0x2   :  { %9 = vsyncpa [#allocation4], 0  ;;  %s171_s9 = smov [#allocation2]   ;;  %s172_s11 = smov [#allocation5]  }
   0x3   :  { %s16_s10 = sshll.u32 %s171_s9, 4  ;;  %s26_s12 = sshll.u32 %s172_s11, 4  ;;  %s17_s10 = int_to_ptr.vmem [resolvable:$true] %s16_s10  ;;  %s27_s12 = int_to_ptr.vmem [resolvable:$true] %s26_s12 }
   0x4   :  { %s113_s13 = scalar_lea.vmem %s17_s10, 128  ;;  %p118_p1 = scmp.lt.s32.totalorder %s17_s10, %s17_s10 }
   0x5   :  { %p114_p0 = scmp.ne.s32.totalorder %s17_s10, %s113_s13  ;;  %p119_p2 = scmp.lt.s32.totalorder %s113_s13, %s113_s13 }
   0x7   :  { %p120_p3 = por %p119_p2, %p118_p1 }
   0x9   :  { %p121_p4 = pnand %p120_p3, %p114_p0 }
   0xb   :  { %124 = shalt.err (!%p121_p4)
}
   0xc   :  { %19 = dma.hbm_to_vmem [thread:$0]  %s198_s0, 128, %s17_s10, [#allocation3]  }
   0xd   :  { %s133_s16 = scalar_lea.vmem %s27_s12, 128  ;;  %p138_p6 = scmp.lt.s32.totalorder %s27_s12, %s27_s12 }
   0xe   :  { %p134_p5 = scmp.ne.s32.totalorder %s27_s12, %s133_s16  ;;  %p139_p7 = scmp.lt.s32.totalorder %s133_s16, %s133_s16 }
  0x10   :  { %p140_p8 = por %p139_p7, %p138_p6 }
  0x12   :  { %p141_p9 = pnand %p140_p8, %p134_p5 }
  0x14   :  { %144 = shalt.err (!%p141_p9)
}
  0x15   :  { %29 = dma.hbm_to_vmem [thread:$0]  %s199_s1, 128, %s27_s12, [#allocation6]  }
  0x16   :  { %165 = dma.done.wait [#allocation3], 128  }
  0x17   :  { %166 = vsyncadd [#allocation3], 4294967168 }
  0x18   :  { %167 = dma.done.wait [#allocation6], 128  }
  0x19   :  { %168 = vsyncadd [#allocation6], 4294967168  ;;  %vm38_vm0 = vcmask 261120   ;;  %v36_v0 = vld [vmem:[#allocation2] sm:$0xff]  ;;  %v37_v2 = vld [vmem:[#allocation5] sm:$0xff]  ;;  %vm67_vm1 = vcmask 7168  }
  0x1a   :  { %v39_v1 = vsel %vm38_vm0, %v36_v0, -inf  ;;  %v51_v3 = vsel %vm38_vm0, %v37_v2, 0.0  ;;  %v54_v4 = vmul.f32 %v37_v2, %v36_v0  ;;  %s173_s0 = smov [#allocation7]  }
  0x1b   :  { %40 = vmax.xlane.f32.xlu0 %v39_v1  ;;  %52 = vadd.xlane.f32.xlu1 %v51_v3  ;;  %s86_s1 = sshll.u32 %s173_s0, 4  ;;  %s87_s1 = int_to_ptr.vmem [resolvable:$true] %s86_s1 }
  0x1c   :  { %v55_v5 = vsel %vm38_vm0, %v54_v4, 0.0  ;;  %s145_s20 = scalar_lea.vmem %s87_s1, 128  ;;  %p150_p11 = scmp.lt.s32.totalorder %s87_s1, %s87_s1 }
  0x1d   :  { %p146_p10 = scmp.ne.s32.totalorder %s87_s1, %s145_s20  ;;  %p151_p12 = scmp.lt.s32.totalorder %s145_s20, %s145_s20 }
  0x1f   :  { %56 = vadd.xlane.f32.xlu1 %v55_v5  ;;  %p152_p13 = por %p151_p12, %p150_p11 }
  0x21   :  { %p153_p0 = pnand %p152_p13, %p146_p10 }
  0xa4   :  { %v41_v6 = vpop.xlane.xlu0 %40  ;;  %v53_v12 = vpop.xlane.xlu1 %52 }
  0xa5   :  { %v42_v7 = vsub.f32 %v36_v0, %v41_v6 }
  0xa7   :  { %v43_v8 = vmul.f32 1.442695, %v42_v7 }
  0xa8   :  { %v57_v16 = vpop.xlane.xlu1 %56 }
  0xa9   :  { %101 = vpow2.f32 %v43_v8 }
  0xb6   :  { %v102_v9 = vpop.eup %101 }
  0xb7   :  { %v45_v10 = vsel %vm38_vm0, %v102_v9, 0.0 }
  0xb8   :  { %46 = vadd.xlane.f32.xlu0 %v45_v10 }
 0x141   :  { %v47_v11 = vpop.xlane.xlu0 %46 }
 0x142   :  { %103 = vlog2.f32 %v47_v11 }
 0x14f   :  { %v104_v13 = vpop.eup %103 }
 0x150   :  { %v49_v14 = vmul.f32 0.6931472, %v104_v13 }
 0x152   :  { %v50_v15 = vadd.f32 %v49_v14, %v41_v6 }
 0x154   :  { %v58_v17 = vmul.f32 %v53_v12, %v50_v15 }
 0x156   :  { %v59_v18 = vsub.f32 %v58_v17, %v57_v16 }
 0x158   :  { %v68_v19 = vsel %vm67_vm1, %v59_v18, 0.0 }
 0x159   :  { %69 = vadd.xlane.f32.xlu0 %v68_v19 }
 0x1e2   :  { %v70_v20 = vpop.xlane.xlu0 %69 }
 0x1e3   :  { %v71_v21 = vrot.slane %v70_v20, 4 }
 0x1e5   :  { %v72_v22 = vadd.f32 %v71_v21, %v70_v20 }
 0x1e7   :  { %v73_v23 = vrot.slane %v72_v22, 2 }
 0x1e9   :  { %v74_v24 = vadd.f32 %v73_v23, %v72_v22 }
 0x1eb   :  { %v75_v25 = vrot.slane %v74_v24, 1 }
 0x1ed   :  { %v76_v26 = vadd.f32 %v75_v25, %v74_v24 }
 0x1ef   :  { %96 = vpush %v76_v26 }
 0x220   :  { %s97_s19 = spop %96 }
 0x221   :  { %v78_v27 = vstv %s97_s19 }
 0x222   :  { %79 = vst [vmem:[#allocation7] sm:$0xff] %v78_v27 }
 0x223   :  { %156 = shalt.err (!%p153_p0)
}
 0x224   :  { %89 = dma.vmem_to_hbm [thread:$0]  %s87_s1, 128, %s200_s2, [#allocation4]  }
 0x225   :  { %169 = dma.done.wait [#allocation4], 128  }
 0x226   :  { %170 = vsyncadd [#allocation4], 4294967168 }
 0x227   :  { %93 = vsyncpa [#allocation3], 1 }
 0x228   :  { %94 = vsyncpa [#allocation6], 1 }
 0x229   :  { %95 = vsyncpa [#allocation4], 1 }

</bundles_post_ra>
